<compile_context>
chip_gen: v7x
topology: tpu7x:2x2x1
jax: 0.10.0
libtpu: 0.0.40
codegen_flags: <defaults>
</compile_context>

<pallas_src>
import jax
import jax.numpy as jnp
from jax.experimental import pallas as pl
from jax.experimental.pallas import tpu as pltpu


def _round_up(x, m):
    return ((x + m - 1) // m) * m


_INV_SQRT2 = 0.7071067811865476


def _gelu_erf(h):
    # Exact (erf-form) GELU, matching PyTorch nn.GELU's default.
    return 0.5 * h * (1.0 + jax.lax.erf(h * _INV_SQRT2))


def _ffn_resident_kernel(x_ref, w1_ref, b1_ref, w2_ref, b2_ref, o_ref):
    # x_ref: (tm, Dp)   row tile
    # w1_ref: (Dp, Hp), b1_ref: (1, Hp), w2_ref: (Hp, Dp), b2_ref: (1, Dp)
    #   -> constant index_map: DMA'd from HBM once, resident across row tiles.
    # o_ref: (tm, Dp)
    h = jnp.dot(x_ref[...], w1_ref[...], preferred_element_type=jnp.float32)
    h = h + b1_ref[...].astype(jnp.float32)
    g = _gelu_erf(h)
    o = jnp.dot(g.astype(w2_ref.dtype), w2_ref[...],
                preferred_element_type=jnp.float32)
    o_ref[...] = (o + b2_ref[...].astype(jnp.float32)).astype(o_ref.dtype)


def _ffn_streaming_kernel(x_ref, w1_ref, b1_ref, w2_ref, b2_ref, o_ref,
                          acc_ref):
    # Fallback when W1+W2 don't fit in VMEM: hidden dim is grid axis 1
    # (reduction of the second matmul); weight tiles stream from HBM.
    j = pl.program_id(1)

    @pl.when(j == 0)
    def _():
        acc_ref[...] = jnp.zeros_like(acc_ref)

    h = jnp.dot(x_ref[...], w1_ref[...], preferred_element_type=jnp.float32)
    h = h + b1_ref[...].astype(jnp.float32)
    g = _gelu_erf(h)
    acc_ref[...] += jnp.dot(g.astype(w2_ref.dtype), w2_ref[...],
                            preferred_element_type=jnp.float32)

    @pl.when(j == pl.num_programs(1) - 1)
    def _():
        out = acc_ref[...] + b2_ref[...].astype(jnp.float32)
        o_ref[...] = out.astype(o_ref.dtype)


def prepare_ffn_params(w1, b1, w2, b2):
    """Pad parameters to lane-aligned (128-multiple) shapes ONCE at init time.

    Zero padding is semantically neutral here: gelu(0) == 0 and zero weight
    rows/columns contribute nothing; padded output columns are sliced off.
    """
    D, H = w1.shape
    assert w2.shape == (H, D) and b1.shape == (H,) and b2.shape == (D,)
    Dp, Hp = _round_up(D, 128), _round_up(H, 128)
    if (Dp, Hp) != (D, H):
        w1 = jnp.pad(w1, ((0, Dp - D), (0, Hp - H)))
        w2 = jnp.pad(w2, ((0, Hp - H), (0, Dp - D)))
    b1 = jnp.pad(b1, (0, Hp - H)).reshape(1, Hp)
    b2 = jnp.pad(b2, (0, Dp - D)).reshape(1, Dp)
    return {"w1": w1, "b1": b1, "w2": w2, "b2": b2, "dim": D, "hidden": H}


def feed_forward(x, params, *, tm=None, tn=512,
                 resident_weight_budget_bytes=16 * 1024 * 1024,
                 vmem_limit_bytes=48 * 1024 * 1024):
    """Fused Linear(D,H) + GELU + Linear(H,D) for x of shape (..., D).

    tm: row (token) tile.  Default: 256 on the resident-weights path (already
        MXU-bound), 768 on the streaming fallback.  Sweep guidance:
        v6e streaming wants tm=768-1024 (raise vmem_limit_bytes to ~100 MiB),
        v5e ~384-512, v7x keep tm*Dp-scaled buffers <= ~40 MiB (64 MiB VMEM).
    tn: hidden tile for the streaming fallback (multiple of 128).
    resident_weight_budget_bytes: if W1+W2 fit under this, they stay resident
        in VMEM (streamed from HBM once per call).  Pallas double-buffers
        them, so the VMEM cost is ~2x this figure.
    """
    w1, b1, w2, b2 = params["w1"], params["b1"], params["w2"], params["b2"]
    D = params["dim"]
    Dp, Hp = w1.shape

    lead = x.shape[:-1]
    assert x.shape[-1] == D
    M = 1
    for s in lead:
        M *= s

    # Pad ONLY the feature dim of x (lane-dense loads/stores); the row dim is
    # left as-is -- cdiv grid + masked boundary block, garbage rows sliced off.
    x2d = x.reshape(M, D)
    if Dp != D:
        x2d = jnp.pad(x2d, ((0, 0), (0, Dp - D)))

    weight_bytes = (w1.size + w2.size) * jnp.dtype(w1.dtype).itemsize
    resident = weight_bytes <= resident_weight_budget_bytes
    if tm is None:
        tm = 256 if resident else 768

    # Row tile: multiple of sublane packing (f32: 8, bf16: 16), clamped so
    # tiny inputs don't get a huge tile; prefer >= 2 row tiles so both
    # TensorCores get work under "parallel" (megacore) sharding.
    sub = max(8, 32 // jnp.dtype(x.dtype).itemsize)
    tm = max(sub, _round_up(min(tm, _round_up(M, sub)), sub))
    if M >= 2 * sub and pl.cdiv(M, tm) < 2:
        tm = _round_up(pl.cdiv(M, 2), sub)
    grid_m = pl.cdiv(M, tm)

    if resident:
        # Cap tm so the (tm, Hp) f32 h / bf16 g intermediates stay <= ~8 MiB.
        max_tm = max(sub, ((8 * 1024 * 1024) // (6 * Hp)) // sub * sub)
        if tm > max_tm:
            tm = max_tm
            grid_m = pl.cdiv(M, tm)
        kernel = _ffn_resident_kernel
        grid = (grid_m,)
        in_specs = [
            pl.BlockSpec((tm, Dp), lambda i: (i, 0)),   # x row tile
            pl.BlockSpec((Dp, Hp), lambda i: (0, 0)),   # W1: resident, one DMA
            pl.BlockSpec((1, Hp), lambda i: (0, 0)),    # b1: resident
            pl.BlockSpec((Hp, Dp), lambda i: (0, 0)),   # W2: resident, one DMA
            pl.BlockSpec((1, Dp), lambda i: (0, 0)),    # b2: resident
        ]
        out_specs = pl.BlockSpec((tm, Dp), lambda i: (i, 0))
        scratch_shapes = []
        dim_sem = ("parallel",)
    else:
        # Hidden tile must divide Hp exactly: it is a reduction axis, so an
        # overhanging tile would fold garbage into the accumulator.
        tn = min(_round_up(tn, 128), Hp)
        while Hp % tn:
            tn -= 128
        kernel = _ffn_streaming_kernel
        grid = (grid_m, Hp // tn)
        in_specs = [
            pl.BlockSpec((tm, Dp), lambda i, j: (i, 0)),  # x (resident over j)
            pl.BlockSpec((Dp, tn), lambda i, j: (0, j)),  # W1 column tile
            pl.BlockSpec((1, tn), lambda i, j: (0, j)),   # b1 tile
            pl.BlockSpec((tn, Dp), lambda i, j: (j, 0)),  # W2 row tile
            pl.BlockSpec((1, Dp), lambda i, j: (0, 0)),   # b2 (resident)
        ]
        out_specs = pl.BlockSpec((tm, Dp), lambda i, j: (i, 0))
        scratch_shapes = [pltpu.VMEM((tm, Dp), jnp.float32)]
        dim_sem = ("parallel", "arbitrary")

    out = pl.pallas_call(
        kernel,
        out_shape=jax.ShapeDtypeStruct((M, Dp), x.dtype),
        grid=grid,
        in_specs=in_specs,
        out_specs=out_specs,
        scratch_shapes=scratch_shapes,
        compiler_params=pltpu.CompilerParams(
            dimension_semantics=dim_sem,
            vmem_limit_bytes=vmem_limit_bytes,
        ),
    )(x2d, w1, b1, w2, b2)

    if Dp != D:
        out = out[:, :D]
    return out.reshape(*lead, D)


def _reference(x, w1, b1, w2, b2):
    xf = x.astype(jnp.float32)
    h = xf @ w1.astype(jnp.float32) + b1.astype(jnp.float32)
    g = jax.nn.gelu(h, approximate=False)   # exact erf GELU (PyTorch default)
    return g @ w2.astype(jnp.float32) + b2.astype(jnp.float32)


if __name__ == "__main__":
    key = jax.random.PRNGKey(0)
    B, N, D, H = 2, 8, 32, 64  # batch, tokens, dim, hidden_dim
    kx, k1, kb1, k2, kb2 = jax.random.split(key, 5)

    # bf16 activations / weights -> MXU-native matmuls; math accumulates in f32.
    x = jax.random.normal(kx, (B, N, D), dtype=jnp.float32).astype(jnp.bfloat16)
    w1 = (jax.random.normal(k1, (D, H), jnp.float32) * 0.02).astype(jnp.bfloat16)
    b1 = (jax.random.normal(kb1, (H,), jnp.float32) * 0.02).astype(jnp.bfloat16)
    w2 = (jax.random.normal(k2, (H, D), jnp.float32) * 0.02).astype(jnp.bfloat16)
    b2 = (jax.random.normal(kb2, (D,), jnp.float32) * 0.02).astype(jnp.bfloat16)

    params = prepare_ffn_params(w1, b1, w2, b2)   # padding hoisted to init time
    ref = _reference(x, w1, b1, w2, b2)

    # 1) resident-weights fast path (default).
    out = jax.block_until_ready(feed_forward(x, params))
    assert out.shape == (B, N, D)
    assert jnp.allclose(out.astype(jnp.float32), ref, atol=1e-2, rtol=1e-2), \
        "resident path mismatch vs reference"

    # 2) streaming fallback path (forced by a zero residency budget).
    out_s = jax.block_until_ready(
        feed_forward(x, params, resident_weight_budget_bytes=0))
    assert jnp.allclose(out_s.astype(jnp.float32), ref, atol=1e-2, rtol=1e-2), \
        "streaming path mismatch vs reference"

    # 3) row count not a multiple of the tile (masked boundary block, no M pad).
    x_odd = x[:, :5, :]
    out_o = jax.block_until_ready(feed_forward(x_odd, params))
    assert out_o.shape == (B, 5, D)
    assert jnp.allclose(out_o.astype(jnp.float32), ref[:, :5, :],
                        atol=1e-2, rtol=1e-2), "odd-M path mismatch vs reference"

    print("KERNEL_OK")
</pallas_src>

<mosaic_0001>
module attributes {stable_mosaic.version = 11 : i64} {
  func.func @_ffn_resident_kernel(%arg0: i32, %arg1: memref<16x128xbf16, #tpu.memory_space<vmem>>, %arg2: memref<128x128xbf16, #tpu.memory_space<vmem>>, %arg3: memref<1x128xbf16, #tpu.memory_space<vmem>>, %arg4: memref<128x128xbf16, #tpu.memory_space<vmem>>, %arg5: memref<1x128xbf16, #tpu.memory_space<vmem>>, %arg6: memref<16x128xbf16, #tpu.memory_space<vmem>>) attributes {dimension_semantics = [#tpu.dimension_semantics<parallel>], iteration_bounds = array<i64: 1>, scalar_prefetch = 0 : i64, scratch_operands = 0 : i64, tpu.core_type = #tpu.core_type<tc>, window_params = [{transform_indices = @transform_0, window_bounds = array<i64: 16, 128>}, {pipeline_mode = #tpu.pipeline_mode<synchronous>, transform_indices = @transform_1, window_bounds = array<i64: 128, 128>}, {pipeline_mode = #tpu.pipeline_mode<synchronous>, transform_indices = @transform_2, window_bounds = array<i64: 1, 128>}, {pipeline_mode = #tpu.pipeline_mode<synchronous>, transform_indices = @transform_3, window_bounds = array<i64: 128, 128>}, {pipeline_mode = #tpu.pipeline_mode<synchronous>, transform_indices = @transform_4, window_bounds = array<i64: 1, 128>}, {transform_indices = @transform_5, window_bounds = array<i64: 16, 128>}]} {
    %c0 = arith.constant 0 : index
    %c0_0 = arith.constant 0 : index
    %0 = vector.load %arg1[%c0, %c0_0] : memref<16x128xbf16, #tpu.memory_space<vmem>>, vector<16x128xbf16>
    %c0_1 = arith.constant 0 : index
    %c0_2 = arith.constant 0 : index
    %1 = vector.load %arg2[%c0_1, %c0_2] : memref<128x128xbf16, #tpu.memory_space<vmem>>, vector<128x128xbf16>
    %cst = arith.constant dense<0.000000e+00> : vector<16x128xf32>
    %2 = tpu.matmul %0, %1, %cst {dimension_numbers = #tpu.dot_dimension_numbers<[1], [0], [0], [1], [0, 0, 1, 1], [], []>} : vector<16x128xbf16>, vector<128x128xbf16>, vector<16x128xf32> -> vector<16x128xf32>
    %c0_3 = arith.constant 0 : index
    %c0_4 = arith.constant 0 : index
    %3 = vector.load %arg3[%c0_3, %c0_4] : memref<1x128xbf16, #tpu.memory_space<vmem>>, vector<1x128xbf16>
    %4 = arith.extf %3 : vector<1x128xbf16> to vector<1x128xf32>
    %5 = vector.broadcast %4 : vector<1x128xf32> to vector<16x128xf32>
    %6 = arith.addf %2, %5 : vector<16x128xf32>
    %cst_5 = arith.constant 5.000000e-01 : f32
    %7 = vector.broadcast %cst_5 : f32 to vector<16x128xf32>
    %8 = arith.mulf %7, %6 : vector<16x128xf32>
    %cst_6 = arith.constant 0.707106769 : f32
    %9 = vector.broadcast %cst_6 : f32 to vector<16x128xf32>
    %10 = arith.mulf %6, %9 : vector<16x128xf32>
    %11 = math.erf %10 : vector<16x128xf32>
    %cst_7 = arith.constant 1.000000e+00 : f32
    %12 = vector.broadcast %cst_7 : f32 to vector<16x128xf32>
    %13 = arith.addf %12, %11 : vector<16x128xf32>
    %14 = arith.mulf %8, %13 : vector<16x128xf32>
    %15 = arith.truncf %14 : vector<16x128xf32> to vector<16x128xbf16>
    %c0_8 = arith.constant 0 : index
    %c0_9 = arith.constant 0 : index
    %16 = vector.load %arg4[%c0_8, %c0_9] : memref<128x128xbf16, #tpu.memory_space<vmem>>, vector<128x128xbf16>
    %cst_10 = arith.constant dense<0.000000e+00> : vector<16x128xf32>
    %17 = tpu.matmul %15, %16, %cst_10 {dimension_numbers = #tpu.dot_dimension_numbers<[1], [0], [0], [1], [0, 0, 1, 1], [], []>} : vector<16x128xbf16>, vector<128x128xbf16>, vector<16x128xf32> -> vector<16x128xf32>
    %c0_11 = arith.constant 0 : index
    %c0_12 = arith.constant 0 : index
    %18 = vector.load %arg5[%c0_11, %c0_12] : memref<1x128xbf16, #tpu.memory_space<vmem>>, vector<1x128xbf16>
    %19 = arith.extf %18 : vector<1x128xbf16> to vector<1x128xf32>
    %20 = vector.broadcast %19 : vector<1x128xf32> to vector<16x128xf32>
    %21 = arith.addf %17, %20 : vector<16x128xf32>
    %22 = arith.truncf %21 : vector<16x128xf32> to vector<16x128xbf16>
    %c0_13 = arith.constant 0 : index
    %c0_14 = arith.constant 0 : index
    %23 = vector.load %arg6[%c0_13, %c0_14] : memref<16x128xbf16, #tpu.memory_space<vmem>>, vector<16x128xbf16>
    tpu.vector_store %arg6[%c0_13, %c0_14], %22 {strides = array<i32>} : memref<16x128xbf16, #tpu.memory_space<vmem>>, vector<16x128xbf16>,
    return
  }
  func.func @transform_0(%arg0: i32) -> (i32, i32) {
    %c0_i32 = arith.constant 0 : i32
    %c0_i32_0 = arith.constant 0 : i32
    return %arg0, %c0_i32 : i32, i32
  }
  func.func @transform_1(%arg0: i32) -> (i32, i32) {
    %c0_i32 = arith.constant 0 : i32
    %c0_i32_0 = arith.constant 0 : i32
    %c0_i32_1 = arith.constant 0 : i32
    return %c0_i32, %c0_i32_0 : i32, i32
  }
  func.func @transform_2(%arg0: i32) -> (i32, i32) {
    %c0_i32 = arith.constant 0 : i32
    %c0_i32_0 = arith.constant 0 : i32
    %c0_i32_1 = arith.constant 0 : i32
    return %c0_i32, %c0_i32_0 : i32, i32
  }
  func.func @transform_3(%arg0: i32) -> (i32, i32) {
    %c0_i32 = arith.constant 0 : i32
    %c0_i32_0 = arith.constant 0 : i32
    %c0_i32_1 = arith.constant 0 : i32
    return %c0_i32, %c0_i32_0 : i32, i32
  }
  func.func @transform_4(%arg0: i32) -> (i32, i32) {
    %c0_i32 = arith.constant 0 : i32
    %c0_i32_0 = arith.constant 0 : i32
    %c0_i32_1 = arith.constant 0 : i32
    return %c0_i32, %c0_i32_0 : i32, i32
  }
  func.func @transform_5(%arg0: i32) -> (i32, i32) {
    %c0_i32 = arith.constant 0 : i32
    %c0_i32_0 = arith.constant 0 : i32
    return %arg0, %c0_i32 : i32, i32
  }
}

</mosaic_0001>

<bundles_post_ra>
// kernel: tpu_custom_call.1
= control target key start
LH: loop header
LB: loop body
LE: loop exit
PB: predicated region body
PF: predicated region fallthrough
CT: control target
= control target key end

     0   :  { %10 = vsyncpa [#allocation3], 0  ;;  %s650_s0 = inlined_call_operand.hbm [shape: bf16[16,128], index: 0, kind: input, shape index: {}]   ;;  %s651_s1 = inlined_call_operand.hbm [shape: bf16[128,128], index: 1, kind: input, shape index: {}]   ;;  %s652_s2 = inlined_call_operand.vmem [shape: bf16[1,128], index: 2, kind: input, shape index: {}]   ;;  %s653_s3 = inlined_call_operand.hbm [shape: bf16[128,128], index: 3, kind: input, shape index: {}]   ;;  %s654_s4 = inlined_call_operand.vmem [shape: bf16[1,128], index: 4, kind: input, shape index: {}]   ;;  %s655_s5 = inlined_call_operand.hbm [shape: bf16[16,128], index: 5, kind: output, shape index: {}]  }
   0x1   :  { %11 = vsyncpa [#allocation6], 0 }
   0x2   :  { %12 = vsyncpa [#allocation4], 0  ;;  %s539_s18 = smov [#allocation5]   ;;  %s540_s20 = smov [#allocation2]  }
   0x3   :  { %s30_s19 = sshll.u32 %s539_s18, 4  ;;  %s18_s21 = sshll.u32 %s540_s20, 4  ;;  %s31_s19 = int_to_ptr.vmem [resolvable:$true] %s30_s19  ;;  %s577_s21 = int_to_ptr.vmem [resolvable:$true] %s18_s21 }
   0x4   :  { %s445_s24 = scalar_lea.hbm %s651_s1, 1024 }
   0x5   :  { %p446_p0 = scmp.ne.s32.totalorder %s651_s1, %s445_s24  ;;  %p449_p1 = scmp.lt.u32.totalorder %s445_s24, %s651_s1 }
   0x7   :  { %p451_p2 = pnand %p449_p1, %p446_p0 }
   0x9   :  { %454 = shalt.err (!%p451_p2)
}
   0xa   :  { %s455_s29 = scalar_lea.vmem %s31_s19, 1024  ;;  %p460_p4 = scmp.lt.s32.totalorder %s31_s19, %s31_s19 }
   0xb   :  { %p456_p3 = scmp.ne.s32.totalorder %s31_s19, %s455_s29  ;;  %p461_p5 = scmp.lt.s32.totalorder %s455_s29, %s455_s29 }
   0xd   :  { %p462_p6 = por %p461_p5, %p460_p4 }
   0xf   :  { %p463_p7 = pnand %p462_p6, %p456_p3 }
  0x11   :  { %466 = shalt.err (!%p463_p7)
}
  0x12   :  { %s541_s30 = smov 64   ;;  %s542_s6 = smov 4  }
  0x13   :  { %36 = dma.hbm_to_vmem [thread:$0]  %s651_s1, 1024, %s31_s19, [#allocation6], %s541_s30, %s541_s30, %s542_s6  }
  0x14   :  { %s467_s11 = scalar_lea.hbm %s650_s0, 128 }
  0x15   :  { %p468_p8 = scmp.ne.s32.totalorder %s650_s0, %s467_s11  ;;  %p471_p9 = scmp.lt.u32.totalorder %s467_s11, %s650_s0 }
  0x17   :  { %p473_p10 = pnand %p471_p9, %p468_p8 }
  0x19   :  { %476 = shalt.err (!%p473_p10)
}
  0x1a   :  { %s477_s16 = scalar_lea.vmem %s577_s21, 128  ;;  %p482_p12 = scmp.lt.s32.totalorder %s577_s21, %s577_s21 }
  0x1b   :  { %p478_p11 = scmp.ne.s32.totalorder %s577_s21, %s477_s16  ;;  %p483_p13 = scmp.lt.s32.totalorder %s477_s16, %s477_s16 }
  0x1d   :  { %p484_p0 = por %p483_p13, %p482_p12 }
  0x1f   :  { %p485_p1 = pnand %p484_p0, %p478_p11 }
  0x21   :  { %488 = shalt.err (!%p485_p1)
}
  0x22   :  { %24 = dma.hbm_to_vmem [thread:$0]  %s650_s0, 128, %s577_s21, [#allocation3], %s541_s30, %s541_s30, %s542_s6  }
  0x23   :  { %s543_s18 = smov [#allocation7]   ;;  %s489_s23 = scalar_lea.hbm %s653_s3, 1024 }
  0x24   :  { %s44_s19 = sshll.u32 %s543_s18, 4  ;;  %p490_p2 = scmp.ne.s32.totalorder %s653_s3, %s489_s23  ;;  %s45_s19 = int_to_ptr.vmem [resolvable:$true] %s44_s19 }
  0x25   :  { %p493_p3 = scmp.lt.u32.totalorder %s489_s23, %s653_s3 }
  0x27   :  { %p495_p4 = pnand %p493_p3, %p490_p2 }
  0x29   :  { %498 = shalt.err (!%p495_p4)
}
  0x2a   :  { %s499_s28 = scalar_lea.vmem %s45_s19, 1024  ;;  %p504_p6 = scmp.lt.s32.totalorder %s45_s19, %s45_s19 }
  0x2b   :  { %p500_p5 = scmp.ne.s32.totalorder %s45_s19, %s499_s28  ;;  %p505_p7 = scmp.lt.s32.totalorder %s499_s28, %s499_s28 }
  0x2d   :  { %p506_p8 = por %p505_p7, %p504_p6 }
  0x2f   :  { %p507_p9 = pnand %p506_p8, %p500_p5 }
  0x31   :  { %510 = shalt.err (!%p507_p9)
}
  0x32   :  { %50 = dma.hbm_to_vmem [thread:$0]  %s653_s3, 1024, %s45_s19, [#allocation6], %s541_s30, %s541_s30, %s542_s6  }
  0x33   :  { %533 = dma.done.wait [#allocation3], 128  }
  0x34   :  { %534 = vsyncadd [#allocation3], 4294967168 }
  0x35   :  { %535 = dma.done.wait [#allocation6], 2048  }
  0x36   :  { %536 = vsyncadd [#allocation6], 4294965248  ;;  %v544_v0 = vmov 0.0   ;;  %vm545_vm0 = vmmov 0   ;;  %v424_v1 = vld [vmem:[#allocation5] sm:$0xff]   ;;  %v425_v2 = vld [vmem:[#allocation5 + $0x8] sm:$0xff]   ;;  %v83_v18 = vlaneseq }
  0x37   :  { %376 = vmatprep.subr.bf16.mxu0 %v544_v0  ;;  %392 = vmatprep.mubr.msk.bf16.mxu0 %vm545_vm0, %v544_v0  ;;  %v426_v3 = vld [vmem:[#allocation5 + $0x10] sm:$0xff]   ;;  %v433_v4 = vld [vmem:[#allocation7] sm:$0xff]   ;;  %v427_v5 = vld [vmem:[#allocation5 + $0x18] sm:$0xff]   ;;  %s546_s8 = smov [#allocation8]  }
  0x38   :  { %396 = vmatprep.subr.bf16.mxu1 %v544_v0  ;;  %412 = vmatprep.mubr.msk.bf16.mxu1 %vm545_vm0, %v544_v0  ;;  %v434_v6 = vld [vmem:[#allocation7 + $0x8] sm:$0xff]   ;;  %v428_v7 = vld [vmem:[#allocation5 + $0x20] sm:$0xff]   ;;  %v430_v9 = vld [vmem:[#allocation5 + $0x30] sm:$0xff]   ;;  %v84_v19 = vshrl.u32 %v83_v18, 7  ;;  %s319_s9 = sshll.u32 %s546_s8, 4  ;;  %s320_s9 = int_to_ptr.vmem [resolvable:$true] %s319_s9 }
  0x39   :  { %377 = vmatpush3.bf16.msra.mxu0 %v424_v1  ;;  %397 = vmatpush3.bf16.msra.mxu1 %v433_v4  ;;  %v429_v8 = vld [vmem:[#allocation5 + $0x28] sm:$0xff]   ;;  %v431_v10 = vld [vmem:[#allocation5 + $0x38] sm:$0xff]   ;;  %v435_v12 = vld [vmem:[#allocation7 + $0x10] sm:$0xff]   ;;  %s511_s10 = scalar_lea.vmem %s320_s9, 128  ;;  %p516_p11 = scmp.lt.s32.totalorder %s320_s9, %s320_s9 }
  0x3a   :  { %378 = vmatprep.subr.bf16.mxu0 %v544_v0  ;;  %398 = vmatprep.subr.bf16.mxu1 %v544_v0  ;;  %v432_v11 = vld [vmem:[#allocation2] sm:$0xff]   ;;  %v437_v14 = vld [vmem:[#allocation7 + $0x20] sm:$0xff]   ;;  %v438_v15 = vld [vmem:[#allocation7 + $0x28] sm:$0xff]   ;;  %v85_v22 = vsub.s32 0, %v84_v19  ;;  %p512_p10 = scmp.ne.s32.totalorder %s320_s9, %s511_s10  ;;  %p517_p12 = scmp.lt.s32.totalorder %s511_s10, %s511_s10 }
  0x3b   :  { %v436_v13 = vld [vmem:[#allocation7 + $0x18] sm:$0xff]   ;;  %v439_v16 = vld [vmem:[#allocation7 + $0x30] sm:$0xff]  }
  0x3c   :  { %v440_v17 = vld [vmem:[#allocation7 + $0x38] sm:$0xff]   ;;  %p518_p13 = por %p517_p12, %p516_p11 }
  0x3d   :  { %379 = vmatpush3.bf16.msra.mxu0 %v425_v2  ;;  %399 = vmatpush3.bf16.msra.mxu1 %v434_v6  ;;  %v81_v20 = vld [vmem:[%s652_s2] sm:$0x1] }
  0x3e   :  { %380 = vmatprep.subr.bf16.mxu0 %v544_v0  ;;  %400 = vmatprep.subr.bf16.mxu1 %v544_v0  ;;  %v82_v21 = vunpack.c.l.bf16 %v81_v20  ;;  %v209_v41 = vld [vmem:[%s654_s4] sm:$0x1]  ;;  %p519_p0 = pnand %p518_p13, %p512_p10 }
  0x3f   :  { %v210_v42 = vunpack.c.l.bf16 %v209_v41 }
  0x40   :  { %v86_v23 = vrot.slane %v82_v21, %v85_v22 }
  0x41   :  { %381 = vmatpush3.bf16.msra.mxu0 %v426_v3  ;;  %401 = vmatpush3.bf16.msra.mxu1 %v435_v12  ;;  %v214_v43 = vrot.slane %v210_v42, %v85_v22 }
  0x42   :  { %382 = vmatprep.subr.bf16.mxu0 %v544_v0  ;;  %402 = vmatprep.subr.bf16.mxu1 %v544_v0 }
  0x45   :  { %383 = vmatpush3.bf16.msra.mxu0 %v427_v5  ;;  %403 = vmatpush3.bf16.msra.mxu1 %v436_v13 }
  0x46   :  { %384 = vmatprep.subr.bf16.mxu0 %v544_v0  ;;  %404 = vmatprep.subr.bf16.mxu1 %v544_v0 }
  0x49   :  { %385 = vmatpush3.bf16.msra.mxu0 %v428_v7  ;;  %405 = vmatpush3.bf16.msra.mxu1 %v437_v14 }
  0x4a   :  { %386 = vmatprep.subr.bf16.mxu0 %v544_v0  ;;  %406 = vmatprep.subr.bf16.mxu1 %v544_v0 }
  0x4d   :  { %387 = vmatpush3.bf16.msra.mxu0 %v429_v8  ;;  %407 = vmatpush3.bf16.msra.mxu1 %v438_v15 }
  0x4e   :  { %388 = vmatprep.subr.bf16.mxu0 %v544_v0  ;;  %408 = vmatprep.subr.bf16.mxu1 %v544_v0 }
  0x51   :  { %389 = vmatpush3.bf16.msra.mxu0 %v430_v9  ;;  %409 = vmatpush3.bf16.msra.mxu1 %v439_v16 }
  0x52   :  { %390 = vmatprep.subr.bf16.mxu0 %v544_v0  ;;  %410 = vmatprep.subr.bf16.mxu1 %v544_v0 }
  0x55   :  { %391 = vmatpush3.bf16.msra.mxu0 %v431_v10  ;;  %411 = vmatpush3.bf16.msra.mxu1 %v440_v17 }
  0x58   :  { %393 = vmatmul.mubr.bf16.vlgmr.msra.gmra.mrb[0].mxu0 %v432_v11 }
 0x12b   :  { %v175_v24 = vpop.f32.mrb[0].mxu0 }
 0x12c   :  { %v176_v25 = vadd.f32 %v175_v24, %v86_v23  ;;  %v394_v26 = vpop.f32.mrb[1].mxu0 }
 0x12d   :  { %v178_v27 = vpop.f32.mrb[2].mxu0 }
 0x12e   :  { %v184_v28 = vmul.f32 0.70710677, %v176_v25  ;;  %v179_v29 = vadd.f32 %v178_v27, %v86_v23  ;;  %v395_v30 = vpop.f32.mrb[3].mxu0  ;;  %v182_v35 = vmul.f32 0.5, %v176_v25 }
 0x130   :  { %441 = verf.f32 %v184_v28  ;;  %v185_v31 = vmul.f32 0.70710677, %v179_v29  ;;  %v183_v36 = vmul.f32 0.5, %v179_v29 }
 0x132   :  { %443 = verf.f32 %v185_v31 }
 0x13a   :  { %v442_v32 = vpop.eup %441 }
 0x13b   :  { %v188_v33 = vadd.f32 1.0, %v442_v32 }
 0x13c   :  { %v444_v34 = vpop.eup %443 }
 0x13d   :  { %v189_v37 = vadd.f32 1.0, %v444_v34  ;;  %v190_v38 = vmul.f32 %v188_v33, %v182_v35 }
 0x13f   :  { %v191_v39 = vmul.f32 %v189_v37, %v183_v36 }
 0x141   :  { %v192_v40 = vpack.c.bf16 %v191_v39, %v190_v38 }
 0x143   :  { %413 = vmatmul.mubr.bf16.vlgmr.msra.gmra.mrb[0].mxu1 %v192_v40 }
 0x216   :  { %v297_v44 = vpop.f32.mrb[0].mxu1 }
 0x217   :  { %v414_v45 = vpop.f32.mrb[1].mxu1  ;;  %v298_v47 = vadd.f32 %v297_v44, %v214_v43 }
 0x218   :  { %v300_v46 = vpop.f32.mrb[2].mxu1 }
 0x219   :  { %v301_v48 = vadd.f32 %v300_v46, %v214_v43  ;;  %v415_v49 = vpop.f32.mrb[3].mxu1 }
 0x21b   :  { %v356_v50 = vpack.c.bf16 %v301_v48, %v298_v47 }
 0x21d   :  { %357 = vst [vmem:[#allocation8] sm:$0xff] %v356_v50  }
 0x21e   :  { %522 = shalt.err (!%p519_p0)
}
 0x21f   :  { %s523_s12 = scalar_lea.hbm %s655_s5, 128 }
 0x220   :  { %p524_p1 = scmp.ne.s32.totalorder %s655_s5, %s523_s12  ;;  %p527_p2 = scmp.lt.u32.totalorder %s523_s12, %s655_s5 }
 0x222   :  { %p529_p3 = pnand %p527_p2, %p524_p1 }
 0x224   :  { %532 = shalt.err (!%p529_p3)
}
 0x225   :  { %325 = dma.vmem_to_hbm [thread:$0]  %s320_s9, 128, %s655_s5, [#allocation4], %s541_s30, %s541_s30, %s542_s6  }
 0x226   :  { %537 = dma.done.wait [#allocation4], 128  }
 0x227   :  { %538 = vsyncadd [#allocation4], 4294967168 }
 0x228   :  { %329 = vsyncpa [#allocation3], 1 }
 0x229   :  { %330 = vsyncpa [#allocation6], 1 }
 0x22a   :  { %331 = vsyncpa [#allocation4], 1 }

</bundles_post_ra>
